<compile_context>
chip_gen: v7x
topology: tpu7x:2x2x1
jax: 0.10.0
libtpu: 0.0.40
codegen_flags: <defaults>
</compile_context>

<pallas_src>
import jax
import jax.numpy as jnp
from jax import lax
from jax.experimental import pallas as pl
from jax.experimental.pallas import tpu as pltpu

# Small, module-consistent sizes.
VOCAB = 50      # vocab_size (synthetic)
EMBED = 32      # embedding dim (synthetic stand-in for PubMed-w2v)
HID = 16        # GRU hidden per direction; bidirectional concat -> 32 == s_v dim
SEQ = 8         # sentence length
BATCH = 2       # number of sentences

# Derived layout constants.
BP = 8                    # batch rows padded to one sublane tile
VP = 56                   # VOCAB rounded up to a sublane multiple (8)
H2 = 2 * HID              # 32  = fused hidden width  [h_fwd | h_bwd]
G = 6 * HID               # 96  = fused gate width    [r_f|r_b|z_f|z_b|n_f|n_b]
ROW_WHH = 2 * VP          # 112 : start of block-diagonal W_hh
ROW_BHH = ROW_WHH + H2    # 144 : b_hh row
ROW_OUT = ROW_BHH + 1     # 145 : [w_out (first 32 lanes) | b_out (lane 32)]
SLAB_ROWS = 2 * VP + H2 + 8   # 152 (sublane-aligned)


# ----------------------------------------------------------------------------
# Pallas kernel
# ----------------------------------------------------------------------------
def scannet_kernel(tok_ref, p_ref, o_ref):
    B = o_ref.shape[0]
    T = tok_ref.shape[0] // BP
    TB = T * BP

    # ---- packed parameters (static, sublane-aligned slices; single DMA'd slab)
    w_tab = p_ref[0:ROW_WHH, :]                      # (2*VP, 6H) per-token gate tables
    w_hh = p_ref[ROW_WHH:ROW_BHH, :]                 # (2H, 6H)  block-diag recurrent W
    b_hh = p_ref[ROW_BHH:ROW_BHH + 1, :]             # (1, 6H)
    w_out = p_ref[ROW_OUT:ROW_OUT + 1, 0:H2]         # (1, 2H)   Linear(32,1) weight row
    b_out = p_ref[ROW_OUT:ROW_OUT + 1, H2:H2 + 1]    # (1, 1)    Linear(32,1) bias

    # ---- embedding lookup + input projection for BOTH directions, hoisted out
    #      of the recurrence as ONE matmul.  Row r = t*BP + b carries the forward
    #      token at time t (cols 0:VP) and the time-reversed token (time T-1-t,
    #      cols VP:2VP), so gi_all[r] = emb[tok]@W_ih + b_ih in the fused layout.
    tf = tok_ref[:, 0:1]                             # (T*BP, 1) forward-order tokens
    tb = tok_ref[:, 1:2]                             # (T*BP, 1) time-reversed tokens
    col = lax.broadcasted_iota(jnp.int32, (TB, 2 * VP), 1)
    oh = ((col == tf) | (col == tb + VP)).astype(jnp.float32)        # (T*BP, 2*VP)
    gi_all = jnp.dot(oh, w_tab, preferred_element_type=jnp.float32)  # (T*BP, 6H)

    # ---- fused bidirectional recurrence: one h@W_hh per step, both directions
    #      side by side on lanes.  T=8 -> fully unrolled serial chain; each
    #      per-step gi slice is a whole sublane tile (BP=8 rows).
    h = jnp.zeros((BP, H2), jnp.float32)             # [h_fwd | h_bwd]
    for t in range(T):
        gi = gi_all[t * BP:(t + 1) * BP, :]                               # (BP, 6H)
        gh = jnp.dot(h, w_hh, preferred_element_type=jnp.float32) + b_hh  # (BP, 6H)
        r = jax.nn.sigmoid(gi[:, 0:H2] + gh[:, 0:H2])
        z = jax.nn.sigmoid(gi[:, H2:2 * H2] + gh[:, H2:2 * H2])
        n = jnp.tanh(gi[:, 2 * H2:3 * H2] + r * gh[:, 2 * H2:3 * H2])
        h = (1.0 - z) * n + z * h

    # ---- out = Linear(32, 1); sig = Sigmoid()  (VPU mul + lane reduce, no MXU)
    raw = jnp.sum(h * w_out, axis=-1, keepdims=True) + b_out              # (BP, 1)
    o_ref[...] = jax.nn.sigmoid(raw[0:B, :])


# ----------------------------------------------------------------------------
# Parameters (PyTorch-layout, synthetic) and packing into the kernel slab
# ----------------------------------------------------------------------------
def init_params(key):
    ks = jax.random.split(key, 11)
    scale = 0.1

    def nrm(k, shape):
        return jax.random.normal(k, shape, jnp.float32) * scale

    return dict(
        embedding=nrm(ks[0], (VOCAB, EMBED)),        # frozen embedding table
        w_ih_f=nrm(ks[1], (EMBED, 3 * HID)),         # forward GRU W_ih^T  (gate order r,z,n)
        w_hh_f=nrm(ks[2], (HID, 3 * HID)),           # forward GRU W_hh^T
        b_ih_f=nrm(ks[3], (1, 3 * HID)),
        b_hh_f=nrm(ks[4], (1, 3 * HID)),
        w_ih_b=nrm(ks[5], (EMBED, 3 * HID)),         # backward GRU W_ih^T
        w_hh_b=nrm(ks[6], (HID, 3 * HID)),           # backward GRU W_hh^T
        b_ih_b=nrm(ks[7], (1, 3 * HID)),
        b_hh_b=nrm(ks[8], (1, 3 * HID)),
        w_out=nrm(ks[9], (2 * HID, 1)),              # nn.Linear(32, 1) weight^T
        b_out=nrm(ks[10], (1, 1)),                   # nn.Linear(32, 1) bias
    )


def pack_params(params):
    """Fold embedding + input projections + biases into one (152, 96) f32 slab."""
    H = HID
    hi = lax.Precision.HIGHEST

    def interleave_gates(f, b):
        # (..., 3H) x2 -> (..., 6H) laid out [r_f|r_b|z_f|z_b|n_f|n_b]
        parts = []
        for g in range(3):
            parts.append(f[..., g * H:(g + 1) * H])
            parts.append(b[..., g * H:(g + 1) * H])
        return jnp.concatenate(parts, axis=-1)

    zW = jnp.zeros_like(params["w_ih_f"])
    zb = jnp.zeros_like(params["b_ih_f"])
    w_ih_fwd_only = interleave_gates(params["w_ih_f"], zW)      # (E, 6H) fwd cols only
    w_ih_bwd_only = interleave_gates(zW, params["w_ih_b"])
    b_ih_fwd_only = interleave_gates(params["b_ih_f"], zb)      # (1, 6H)
    b_ih_bwd_only = interleave_gates(zb, params["b_ih_b"])

    # Per-token gate tables: emb[v] @ W_ih + b_ih  (embedding is frozen).
    tab_f = jnp.dot(params["embedding"], w_ih_fwd_only, precision=hi) + b_ih_fwd_only
    tab_b = jnp.dot(params["embedding"], w_ih_bwd_only, precision=hi) + b_ih_bwd_only
    tab_f = jnp.zeros((VP, G), jnp.float32).at[:VOCAB].set(tab_f)
    tab_b = jnp.zeros((VP, G), jnp.float32).at[:VOCAB].set(tab_b)

    # Block-diagonal recurrent weights in the interleaved gate layout.
    w_hh = jnp.zeros((H2, G), jnp.float32)
    for g in range(3):
        w_hh = w_hh.at[0:H, (2 * g) * H:(2 * g + 1) * H].set(
            params["w_hh_f"][:, g * H:(g + 1) * H])
        w_hh = w_hh.at[H:H2, (2 * g + 1) * H:(2 * g + 2) * H].set(
            params["w_hh_b"][:, g * H:(g + 1) * H])

    b_hh = interleave_gates(params["b_hh_f"], params["b_hh_b"])  # (1, 6H)

    misc = jnp.zeros((8, G), jnp.float32)
    misc = misc.at[0, :].set(b_hh[0])
    misc = misc.at[1, 0:H2].set(params["w_out"][:, 0])
    misc = misc.at[1, H2].set(params["b_out"][0, 0])

    slab = jnp.concatenate([tab_f, tab_b, w_hh, misc], axis=0).astype(jnp.float32)
    assert slab.shape == (SLAB_ROWS, G)
    return slab


# ----------------------------------------------------------------------------
# Wrapper
# ----------------------------------------------------------------------------
@jax.jit
def scannet_forward(tokens, slab):
    """tokens: (B, T) int32 sentence tokens -> (B, 1) sigmoid scores."""
    B, T = tokens.shape
    assert B <= BP
    tok_tm = tokens.T.astype(jnp.int32)                           # (T, B) time-major
    tok_tm = jnp.concatenate(
        [tok_tm, jnp.zeros((T, BP - B), jnp.int32)], axis=1)      # (T, BP) pad rows
    tok_sched = jnp.stack(
        [tok_tm.reshape(-1), tok_tm[::-1, :].reshape(-1)], axis=1)  # (T*BP, 2) [fwd, rev]

    vmem = pl.BlockSpec(memory_space=pltpu.MemorySpace.VMEM)
    return pl.pallas_call(
        scannet_kernel,
        out_shape=jax.ShapeDtypeStruct((B, 1), jnp.float32),
        in_specs=[vmem, vmem],
        out_specs=vmem,
    )(tok_sched, slab)


# ----------------------------------------------------------------------------
# Pure-JAX reference (mirrors the PyTorch module) for a correctness check
# ----------------------------------------------------------------------------
def scannet_reference(tokens, params):
    H = HID
    hi = lax.Precision.HIGHEST
    x = jnp.take(params["embedding"], tokens, axis=0).astype(jnp.float32)  # (B, T, E)
    B, T, _ = x.shape

    def cell(x_t, h, w_ih, w_hh, b_ih, b_hh):
        gi = jnp.dot(x_t, w_ih, precision=hi) + b_ih
        gh = jnp.dot(h, w_hh, precision=hi) + b_hh
        r = jax.nn.sigmoid(gi[:, 0:H] + gh[:, 0:H])
        z = jax.nn.sigmoid(gi[:, H:2 * H] + gh[:, H:2 * H])
        n = jnp.tanh(gi[:, 2 * H:] + r * gh[:, 2 * H:])
        return (1.0 - z) * n + z * h

    h_f = jnp.zeros((B, H), jnp.float32)
    h_b = jnp.zeros((B, H), jnp.float32)
    for t in range(T):
        h_f = cell(x[:, t], h_f, params["w_ih_f"], params["w_hh_f"],
                   params["b_ih_f"], params["b_hh_f"])
        h_b = cell(x[:, T - 1 - t], h_b, params["w_ih_b"], params["w_hh_b"],
                   params["b_ih_b"], params["b_hh_b"])
    s_v = jnp.concatenate([h_f, h_b], axis=1)
    raw = jnp.dot(s_v, params["w_out"], precision=hi) + params["b_out"]
    return jax.nn.sigmoid(raw)


if __name__ == "__main__":
    key = jax.random.PRNGKey(0)
    k_params, k_tok = jax.random.split(key)
    params = init_params(k_params)
    slab = pack_params(params)
    tokens = jax.random.randint(k_tok, (BATCH, SEQ), 0, VOCAB, dtype=jnp.int32)

    out = scannet_forward(tokens, slab)
    out = jax.block_until_ready(out)

    ref = scannet_reference(tokens, params)
    assert out.shape == (BATCH, 1)
    assert bool(jnp.all((out >= 0.0) & (out <= 1.0)))
    assert bool(jnp.allclose(out, ref, atol=2e-3, rtol=2e-3))
    print("KERNEL_OK")
</pallas_src>

<mosaic_0001>
module attributes {stable_mosaic.version = 11 : i64} {
  func.func @scannet_kernel(%arg0: memref<64x2xi32, #tpu.memory_space<vmem>>, %arg1: memref<152x96xf32, #tpu.memory_space<vmem>>, %arg2: memref<2x1xf32, #tpu.memory_space<vmem>>) attributes {dimension_semantics = [], scalar_prefetch = 0 : i64, scratch_operands = 0 : i64, tpu.core_type = #tpu.core_type<tc>} {
    %c0 = arith.constant 0 : index
    %c0_0 = arith.constant 0 : index
    %0 = vector.load %arg1[%c0, %c0_0] : memref<152x96xf32, #tpu.memory_space<vmem>>, vector<112x96xf32>
    %c112 = arith.constant 112 : index
    %c0_1 = arith.constant 0 : index
    %1 = vector.load %arg1[%c112, %c0_1] : memref<152x96xf32, #tpu.memory_space<vmem>>, vector<32x96xf32>
    %c144 = arith.constant 144 : index
    %c0_2 = arith.constant 0 : index
    %2 = vector.load %arg1[%c144, %c0_2] : memref<152x96xf32, #tpu.memory_space<vmem>>, vector<1x96xf32>
    %c145 = arith.constant 145 : index
    %c0_3 = arith.constant 0 : index
    %3 = vector.load %arg1[%c145, %c0_3] : memref<152x96xf32, #tpu.memory_space<vmem>>, vector<1x32xf32>
    %c145_4 = arith.constant 145 : index
    %c32 = arith.constant 32 : index
    %4 = vector.load %arg1[%c145_4, %c32] : memref<152x96xf32, #tpu.memory_space<vmem>>, vector<1x1xf32>
    %c0_5 = arith.constant 0 : index
    %c0_6 = arith.constant 0 : index
    %5 = vector.load %arg0[%c0_5, %c0_6] : memref<64x2xi32, #tpu.memory_space<vmem>>, vector<64x1xi32>
    %c0_7 = arith.constant 0 : index
    %c1 = arith.constant 1 : index
    %6 = vector.load %arg0[%c0_7, %c1] : memref<64x2xi32, #tpu.memory_space<vmem>>, vector<64x1xi32>
    %7 = tpu.iota {dimensions = array<i32: 1>} : vector<64x112xi32>
    %8 = vector.broadcast %5 : vector<64x1xi32> to vector<64x112xi32>
    %9 = arith.cmpi eq, %7, %8 : vector<64x112xi32>
    %c56_i32 = arith.constant 56 : i32
    %10 = vector.broadcast %c56_i32 : i32 to vector<64x1xi32>
    %11 = arith.addi %6, %10 : vector<64x1xi32>
    %12 = vector.broadcast %11 : vector<64x1xi32> to vector<64x112xi32>
    %13 = arith.cmpi eq, %7, %12 : vector<64x112xi32>
    %14 = arith.ori %9, %13 : vector<64x112xi1>
    %15 = arith.extui %14 : vector<64x112xi1> to vector<64x112xi32>
    %16 = arith.sitofp %15 : vector<64x112xi32> to vector<64x112xf32>
    %cst = arith.constant dense<0.000000e+00> : vector<64x96xf32>
    %17 = tpu.matmul %16, %0, %cst {dimension_numbers = #tpu.dot_dimension_numbers<[1], [0], [0], [1], [0, 0, 1, 1], [], []>} : vector<64x112xf32>, vector<112x96xf32>, vector<64x96xf32> -> vector<64x96xf32>
    %cst_8 = arith.constant 0.000000e+00 : f32
    %18 = vector.broadcast %cst_8 : f32 to vector<8x32xf32>
    %19 = vector.extract_strided_slice %17 {offsets = [0, 0], sizes = [8, 96], strides = [1, 1]} : vector<64x96xf32> to vector<8x96xf32>
    %cst_9 = arith.constant dense<0.000000e+00> : vector<8x96xf32>
    %20 = tpu.matmul %18, %1, %cst_9 {dimension_numbers = #tpu.dot_dimension_numbers<[1], [0], [0], [1], [0, 0, 1, 1], [], []>} : vector<8x32xf32>, vector<32x96xf32>, vector<8x96xf32> -> vector<8x96xf32>
    %21 = vector.broadcast %2 : vector<1x96xf32> to vector<8x96xf32>
    %22 = arith.addf %20, %21 : vector<8x96xf32>
    %23 = vector.extract_strided_slice %19 {offsets = [0, 0], sizes = [8, 32], strides = [1, 1]} : vector<8x96xf32> to vector<8x32xf32>
    %24 = vector.extract_strided_slice %22 {offsets = [0, 0], sizes = [8, 32], strides = [1, 1]} : vector<8x96xf32> to vector<8x32xf32>
    %25 = arith.addf %23, %24 : vector<8x32xf32>
    %26 = arith.negf %25 : vector<8x32xf32>
    %27 = math.exp %26 : vector<8x32xf32>
    %cst_10 = arith.constant 1.000000e+00 : f32
    %28 = vector.broadcast %cst_10 : f32 to vector<8x32xf32>
    %29 = arith.addf %28, %27 : vector<8x32xf32>
    %30 = arith.divf %28, %29 : vector<8x32xf32>
    %31 = vector.extract_strided_slice %19 {offsets = [0, 32], sizes = [8, 32], strides = [1, 1]} : vector<8x96xf32> to vector<8x32xf32>
    %32 = vector.extract_strided_slice %22 {offsets = [0, 32], sizes = [8, 32], strides = [1, 1]} : vector<8x96xf32> to vector<8x32xf32>
    %33 = arith.addf %31, %32 : vector<8x32xf32>
    %34 = arith.negf %33 : vector<8x32xf32>
    %35 = math.exp %34 : vector<8x32xf32>
    %cst_11 = arith.constant 1.000000e+00 : f32
    %36 = vector.broadcast %cst_11 : f32 to vector<8x32xf32>
    %37 = arith.addf %36, %35 : vector<8x32xf32>
    %38 = arith.divf %36, %37 : vector<8x32xf32>
    %39 = vector.extract_strided_slice %19 {offsets = [0, 64], sizes = [8, 32], strides = [1, 1]} : vector<8x96xf32> to vector<8x32xf32>
    %40 = vector.extract_strided_slice %22 {offsets = [0, 64], sizes = [8, 32], strides = [1, 1]} : vector<8x96xf32> to vector<8x32xf32>
    %41 = arith.mulf %30, %40 : vector<8x32xf32>
    %42 = arith.addf %39, %41 : vector<8x32xf32>
    %43 = math.tanh %42 : vector<8x32xf32>
    %cst_12 = arith.constant 1.000000e+00 : f32
    %44 = vector.broadcast %cst_12 : f32 to vector<8x32xf32>
    %45 = arith.subf %44, %38 : vector<8x32xf32>
    %46 = arith.mulf %45, %43 : vector<8x32xf32>
    %47 = arith.mulf %38, %18 : vector<8x32xf32>
    %48 = arith.addf %46, %47 : vector<8x32xf32>
    %49 = vector.extract_strided_slice %17 {offsets = [8, 0], sizes = [8, 96], strides = [1, 1]} : vector<64x96xf32> to vector<8x96xf32>
    %cst_13 = arith.constant dense<0.000000e+00> : vector<8x96xf32>
    %50 = tpu.matmul %48, %1, %cst_13 {dimension_numbers = #tpu.dot_dimension_numbers<[1], [0], [0], [1], [0, 0, 1, 1], [], []>} : vector<8x32xf32>, vector<32x96xf32>, vector<8x96xf32> -> vector<8x96xf32>
    %51 = vector.broadcast %2 : vector<1x96xf32> to vector<8x96xf32>
    %52 = arith.addf %50, %51 : vector<8x96xf32>
    %53 = vector.extract_strided_slice %49 {offsets = [0, 0], sizes = [8, 32], strides = [1, 1]} : vector<8x96xf32> to vector<8x32xf32>
    %54 = vector.extract_strided_slice %52 {offsets = [0, 0], sizes = [8, 32], strides = [1, 1]} : vector<8x96xf32> to vector<8x32xf32>
    %55 = arith.addf %53, %54 : vector<8x32xf32>
    %56 = arith.negf %55 : vector<8x32xf32>
    %57 = math.exp %56 : vector<8x32xf32>
    %cst_14 = arith.constant 1.000000e+00 : f32
    %58 = vector.broadcast %cst_14 : f32 to vector<8x32xf32>
    %59 = arith.addf %58, %57 : vector<8x32xf32>
    %60 = arith.divf %58, %59 : vector<8x32xf32>
    %61 = vector.extract_strided_slice %49 {offsets = [0, 32], sizes = [8, 32], strides = [1, 1]} : vector<8x96xf32> to vector<8x32xf32>
    %62 = vector.extract_strided_slice %52 {offsets = [0, 32], sizes = [8, 32], strides = [1, 1]} : vector<8x96xf32> to vector<8x32xf32>
    %63 = arith.addf %61, %62 : vector<8x32xf32>
    %64 = arith.negf %63 : vector<8x32xf32>
    %65 = math.exp %64 : vector<8x32xf32>
    %cst_15 = arith.constant 1.000000e+00 : f32
    %66 = vector.broadcast %cst_15 : f32 to vector<8x32xf32>
    %67 = arith.addf %66, %65 : vector<8x32xf32>
    %68 = arith.divf %66, %67 : vector<8x32xf32>
    %69 = vector.extract_strided_slice %49 {offsets = [0, 64], sizes = [8, 32], strides = [1, 1]} : vector<8x96xf32> to vector<8x32xf32>
    %70 = vector.extract_strided_slice %52 {offsets = [0, 64], sizes = [8, 32], strides = [1, 1]} : vector<8x96xf32> to vector<8x32xf32>
    %71 = arith.mulf %60, %70 : vector<8x32xf32>
    %72 = arith.addf %69, %71 : vector<8x32xf32>
    %73 = math.tanh %72 : vector<8x32xf32>
    %cst_16 = arith.constant 1.000000e+00 : f32
    %74 = vector.broadcast %cst_16 : f32 to vector<8x32xf32>
    %75 = arith.subf %74, %68 : vector<8x32xf32>
    %76 = arith.mulf %75, %73 : vector<8x32xf32>
    %77 = arith.mulf %68, %48 : vector<8x32xf32>
    %78 = arith.addf %76, %77 : vector<8x32xf32>
    %79 = vector.extract_strided_slice %17 {offsets = [16, 0], sizes = [8, 96], strides = [1, 1]} : vector<64x96xf32> to vector<8x96xf32>
    %cst_17 = arith.constant dense<0.000000e+00> : vector<8x96xf32>
    %80 = tpu.matmul %78, %1, %cst_17 {dimension_numbers = #tpu.dot_dimension_numbers<[1], [0], [0], [1], [0, 0, 1, 1], [], []>} : vector<8x32xf32>, vector<32x96xf32>, vector<8x96xf32> -> vector<8x96xf32>
    %81 = vector.broadcast %2 : vector<1x96xf32> to vector<8x96xf32>
    %82 = arith.addf %80, %81 : vector<8x96xf32>
    %83 = vector.extract_strided_slice %79 {offsets = [0, 0], sizes = [8, 32], strides = [1, 1]} : vector<8x96xf32> to vector<8x32xf32>
    %84 = vector.extract_strided_slice %82 {offsets = [0, 0], sizes = [8, 32], strides = [1, 1]} : vector<8x96xf32> to vector<8x32xf32>
    %85 = arith.addf %83, %84 : vector<8x32xf32>
    %86 = arith.negf %85 : vector<8x32xf32>
    %87 = math.exp %86 : vector<8x32xf32>
    %cst_18 = arith.constant 1.000000e+00 : f32
    %88 = vector.broadcast %cst_18 : f32 to vector<8x32xf32>
    %89 = arith.addf %88, %87 : vector<8x32xf32>
    %90 = arith.divf %88, %89 : vector<8x32xf32>
    %91 = vector.extract_strided_slice %79 {offsets = [0, 32], sizes = [8, 32], strides = [1, 1]} : vector<8x96xf32> to vector<8x32xf32>
    %92 = vector.extract_strided_slice %82 {offsets = [0, 32], sizes = [8, 32], strides = [1, 1]} : vector<8x96xf32> to vector<8x32xf32>
    %93 = arith.addf %91, %92 : vector<8x32xf32>
    %94 = arith.negf %93 : vector<8x32xf32>
    %95 = math.exp %94 : vector<8x32xf32>
    %cst_19 = arith.constant 1.000000e+00 : f32
    %96 = vector.broadcast %cst_19 : f32 to vector<8x32xf32>
    %97 = arith.addf %96, %95 : vector<8x32xf32>
    %98 = arith.divf %96, %97 : vector<8x32xf32>
    %99 = vector.extract_strided_slice %79 {offsets = [0, 64], sizes = [8, 32], strides = [1, 1]} : vector<8x96xf32> to vector<8x32xf32>
    %100 = vector.extract_strided_slice %82 {offsets = [0, 64], sizes = [8, 32], strides = [1, 1]} : vector<8x96xf32> to vector<8x32xf32>
    %101 = arith.mulf %90, %100 : vector<8x32xf32>
    %102 = arith.addf %99, %101 : vector<8x32xf32>
    %103 = math.tanh %102 : vector<8x32xf32>
    %cst_20 = arith.constant 1.000000e+00 : f32
    %104 = vector.broadcast %cst_20 : f32 to vector<8x32xf32>
    %105 = arith.subf %104, %98 : vector<8x32xf32>
    %106 = arith.mulf %105, %103 : vector<8x32xf32>
    %107 = arith.mulf %98, %78 : vector<8x32xf32>
    %108 = arith.addf %106, %107 : vector<8x32xf32>
    %109 = vector.extract_strided_slice %17 {offsets = [24, 0], sizes = [8, 96], strides = [1, 1]} : vector<64x96xf32> to vector<8x96xf32>
    %cst_21 = arith.constant dense<0.000000e+00> : vector<8x96xf32>
    %110 = tpu.matmul %108, %1, %cst_21 {dimension_numbers = #tpu.dot_dimension_numbers<[1], [0], [0], [1], [0, 0, 1, 1], [], []>} : vector<8x32xf32>, vector<32x96xf32>, vector<8x96xf32> -> vector<8x96xf32>
    %111 = vector.broadcast %2 : vector<1x96xf32> to vector<8x96xf32>
    %112 = arith.addf %110, %111 : vector<8x96xf32>
    %113 = vector.extract_strided_slice %109 {offsets = [0, 0], sizes = [8, 32], strides = [1, 1]} : vector<8x96xf32> to vector<8x32xf32>
    %114 = vector.extract_strided_slice %112 {offsets = [0, 0], sizes = [8, 32], strides = [1, 1]} : vector<8x96xf32> to vector<8x32xf32>
    %115 = arith.addf %113, %114 : vector<8x32xf32>
    %116 = arith.negf %115 : vector<8x32xf32>
    %117 = math.exp %116 : vector<8x32xf32>
    %cst_22 = arith.constant 1.000000e+00 : f32
    %118 = vector.broadcast %cst_22 : f32 to vector<8x32xf32>
    %119 = arith.addf %118, %117 : vector<8x32xf32>
    %120 = arith.divf %118, %119 : vector<8x32xf32>
    %121 = vector.extract_strided_slice %109 {offsets = [0, 32], sizes = [8, 32], strides = [1, 1]} : vector<8x96xf32> to vector<8x32xf32>
    %122 = vector.extract_strided_slice %112 {offsets = [0, 32], sizes = [8, 32], strides = [1, 1]} : vector<8x96xf32> to vector<8x32xf32>
    %123 = arith.addf %121, %122 : vector<8x32xf32>
    %124 = arith.negf %123 : vector<8x32xf32>
    %125 = math.exp %124 : vector<8x32xf32>
    %cst_23 = arith.constant 1.000000e+00 : f32
    %126 = vector.broadcast %cst_23 : f32 to vector<8x32xf32>
    %127 = arith.addf %126, %125 : vector<8x32xf32>
    %128 = arith.divf %126, %127 : vector<8x32xf32>
    %129 = vector.extract_strided_slice %109 {offsets = [0, 64], sizes = [8, 32], strides = [1, 1]} : vector<8x96xf32> to vector<8x32xf32>
    %130 = vector.extract_strided_slice %112 {offsets = [0, 64], sizes = [8, 32], strides = [1, 1]} : vector<8x96xf32> to vector<8x32xf32>
    %131 = arith.mulf %120, %130 : vector<8x32xf32>
    %132 = arith.addf %129, %131 : vector<8x32xf32>
    %133 = math.tanh %132 : vector<8x32xf32>
    %cst_24 = arith.constant 1.000000e+00 : f32
    %134 = vector.broadcast %cst_24 : f32 to vector<8x32xf32>
    %135 = arith.subf %134, %128 : vector<8x32xf32>
    %136 = arith.mulf %135, %133 : vector<8x32xf32>
    %137 = arith.mulf %128, %108 : vector<8x32xf32>
    %138 = arith.addf %136, %137 : vector<8x32xf32>
    %139 = vector.extract_strided_slice %17 {offsets = [32, 0], sizes = [8, 96], strides = [1, 1]} : vector<64x96xf32> to vector<8x96xf32>
    %cst_25 = arith.constant dense<0.000000e+00> : vector<8x96xf32>
    %140 = tpu.matmul %138, %1, %cst_25 {dimension_numbers = #tpu.dot_dimension_numbers<[1], [0], [0], [1], [0, 0, 1, 1], [], []>} : vector<8x32xf32>, vector<32x96xf32>, vector<8x96xf32> -> vector<8x96xf32>
    %141 = vector.broadcast %2 : vector<1x96xf32> to vector<8x96xf32>
    %142 = arith.addf %140, %141 : vector<8x96xf32>
    %143 = vector.extract_strided_slice %139 {offsets = [0, 0], sizes = [8, 32], strides = [1, 1]} : vector<8x96xf32> to vector<8x32xf32>
    %144 = vector.extract_strided_slice %142 {offsets = [0, 0], sizes = [8, 32], strides = [1, 1]} : vector<8x96xf32> to vector<8x32xf32>
    %145 = arith.addf %143, %144 : vector<8x32xf32>
    %146 = arith.negf %145 : vector<8x32xf32>
    %147 = math.exp %146 : vector<8x32xf32>
    %cst_26 = arith.constant 1.000000e+00 : f32
    %148 = vector.broadcast %cst_26 : f32 to vector<8x32xf32>
    %149 = arith.addf %148, %147 : vector<8x32xf32>
    %150 = arith.divf %148, %149 : vector<8x32xf32>
    %151 = vector.extract_strided_slice %139 {offsets = [0, 32], sizes = [8, 32], strides = [1, 1]} : vector<8x96xf32> to vector<8x32xf32>
    %152 = vector.extract_strided_slice %142 {offsets = [0, 32], sizes = [8, 32], strides = [1, 1]} : vector<8x96xf32> to vector<8x32xf32>
    %153 = arith.addf %151, %152 : vector<8x32xf32>
    %154 = arith.negf %153 : vector<8x32xf32>
    %155 = math.exp %154 : vector<8x32xf32>
    %cst_27 = arith.constant 1.000000e+00 : f32
    %156 = vector.broadcast %cst_27 : f32 to vector<8x32xf32>
    %157 = arith.addf %156, %155 : vector<8x32xf32>
    %158 = arith.divf %156, %157 : vector<8x32xf32>
    %159 = vector.extract_strided_slice %139 {offsets = [0, 64], sizes = [8, 32], strides = [1, 1]} : vector<8x96xf32> to vector<8x32xf32>
    %160 = vector.extract_strided_slice %142 {offsets = [0, 64], sizes = [8, 32], strides = [1, 1]} : vector<8x96xf32> to vector<8x32xf32>
    %161 = arith.mulf %150, %160 : vector<8x32xf32>
    %162 = arith.addf %159, %161 : vector<8x32xf32>
    %163 = math.tanh %162 : vector<8x32xf32>
    %cst_28 = arith.constant 1.000000e+00 : f32
    %164 = vector.broadcast %cst_28 : f32 to vector<8x32xf32>
    %165 = arith.subf %164, %158 : vector<8x32xf32>
    %166 = arith.mulf %165, %163 : vector<8x32xf32>
    %167 = arith.mulf %158, %138 : vector<8x32xf32>
    %168 = arith.addf %166, %167 : vector<8x32xf32>
    %169 = vector.extract_strided_slice %17 {offsets = [40, 0], sizes = [8, 96], strides = [1, 1]} : vector<64x96xf32> to vector<8x96xf32>
    %cst_29 = arith.constant dense<0.000000e+00> : vector<8x96xf32>
    %170 = tpu.matmul %168, %1, %cst_29 {dimension_numbers = #tpu.dot_dimension_numbers<[1], [0], [0], [1], [0, 0, 1, 1], [], []>} : vector<8x32xf32>, vector<32x96xf32>, vector<8x96xf32> -> vector<8x96xf32>
    %171 = vector.broadcast %2 : vector<1x96xf32> to vector<8x96xf32>
    %172 = arith.addf %170, %171 : vector<8x96xf32>
    %173 = vector.extract_strided_slice %169 {offsets = [0, 0], sizes = [8, 32], strides = [1, 1]} : vector<8x96xf32> to vector<8x32xf32>
    %174 = vector.extract_strided_slice %172 {offsets = [0, 0], sizes = [8, 32], strides = [1, 1]} : vector<8x96xf32> to vector<8x32xf32>
    %175 = arith.addf %173, %174 : vector<8x32xf32>
    %176 = arith.negf %175 : vector<8x32xf32>
    %177 = math.exp %176 : vector<8x32xf32>
    %cst_30 = arith.constant 1.000000e+00 : f32
    %178 = vector.broadcast %cst_30 : f32 to vector<8x32xf32>
    %179 = arith.addf %178, %177 : vector<8x32xf32>
    %180 = arith.divf %178, %179 : vector<8x32xf32>
    %181 = vector.extract_strided_slice %169 {offsets = [0, 32], sizes = [8, 32], strides = [1, 1]} : vector<8x96xf32> to vector<8x32xf32>
    %182 = vector.extract_strided_slice %172 {offsets = [0, 32], sizes = [8, 32], strides = [1, 1]} : vector<8x96xf32> to vector<8x32xf32>
    %183 = arith.addf %181, %182 : vector<8x32xf32>
    %184 = arith.negf %183 : vector<8x32xf32>
    %185 = math.exp %184 : vector<8x32xf32>
    %cst_31 = arith.constant 1.000000e+00 : f32
    %186 = vector.broadcast %cst_31 : f32 to vector<8x32xf32>
    %187 = arith.addf %186, %185 : vector<8x32xf32>
    %188 = arith.divf %186, %187 : vector<8x32xf32>
    %189 = vector.extract_strided_slice %169 {offsets = [0, 64], sizes = [8, 32], strides = [1, 1]} : vector<8x96xf32> to vector<8x32xf32>
    %190 = vector.extract_strided_slice %172 {offsets = [0, 64], sizes = [8, 32], strides = [1, 1]} : vector<8x96xf32> to vector<8x32xf32>
    %191 = arith.mulf %180, %190 : vector<8x32xf32>
    %192 = arith.addf %189, %191 : vector<8x32xf32>
    %193 = math.tanh %192 : vector<8x32xf32>
    %cst_32 = arith.constant 1.000000e+00 : f32
    %194 = vector.broadcast %cst_32 : f32 to vector<8x32xf32>
    %195 = arith.subf %194, %188 : vector<8x32xf32>
    %196 = arith.mulf %195, %193 : vector<8x32xf32>
    %197 = arith.mulf %188, %168 : vector<8x32xf32>
    %198 = arith.addf %196, %197 : vector<8x32xf32>
    %199 = vector.extract_strided_slice %17 {offsets = [48, 0], sizes = [8, 96], strides = [1, 1]} : vector<64x96xf32> to vector<8x96xf32>
    %cst_33 = arith.constant dense<0.000000e+00> : vector<8x96xf32>
    %200 = tpu.matmul %198, %1, %cst_33 {dimension_numbers = #tpu.dot_dimension_numbers<[1], [0], [0], [1], [0, 0, 1, 1], [], []>} : vector<8x32xf32>, vector<32x96xf32>, vector<8x96xf32> -> vector<8x96xf32>
    %201 = vector.broadcast %2 : vector<1x96xf32> to vector<8x96xf32>
    %202 = arith.addf %200, %201 : vector<8x96xf32>
    %203 = vector.extract_strided_slice %199 {offsets = [0, 0], sizes = [8, 32], strides = [1, 1]} : vector<8x96xf32> to vector<8x32xf32>
    %204 = vector.extract_strided_slice %202 {offsets = [0, 0], sizes = [8, 32], strides = [1, 1]} : vector<8x96xf32> to vector<8x32xf32>
    %205 = arith.addf %203, %204 : vector<8x32xf32>
    %206 = arith.negf %205 : vector<8x32xf32>
    %207 = math.exp %206 : vector<8x32xf32>
    %cst_34 = arith.constant 1.000000e+00 : f32
    %208 = vector.broadcast %cst_34 : f32 to vector<8x32xf32>
    %209 = arith.addf %208, %207 : vector<8x32xf32>
    %210 = arith.divf %208, %209 : vector<8x32xf32>
    %211 = vector.extract_strided_slice %199 {offsets = [0, 32], sizes = [8, 32], strides = [1, 1]} : vector<8x96xf32> to vector<8x32xf32>
    %212 = vector.extract_strided_slice %202 {offsets = [0, 32], sizes = [8, 32], strides = [1, 1]} : vector<8x96xf32> to vector<8x32xf32>
    %213 = arith.addf %211, %212 : vector<8x32xf32>
    %214 = arith.negf %213 : vector<8x32xf32>
    %215 = math.exp %214 : vector<8x32xf32>
    %cst_35 = arith.constant 1.000000e+00 : f32
    %216 = vector.broadcast %cst_35 : f32 to vector<8x32xf32>
    %217 = arith.addf %216, %215 : vector<8x32xf32>
    %218 = arith.divf %216, %217 : vector<8x32xf32>
    %219 = vector.extract_strided_slice %199 {offsets = [0, 64], sizes = [8, 32], strides = [1, 1]} : vector<8x96xf32> to vector<8x32xf32>
    %220 = vector.extract_strided_slice %202 {offsets = [0, 64], sizes = [8, 32], strides = [1, 1]} : vector<8x96xf32> to vector<8x32xf32>
    %221 = arith.mulf %210, %220 : vector<8x32xf32>
    %222 = arith.addf %219, %221 : vector<8x32xf32>
    %223 = math.tanh %222 : vector<8x32xf32>
    %cst_36 = arith.constant 1.000000e+00 : f32
    %224 = vector.broadcast %cst_36 : f32 to vector<8x32xf32>
    %225 = arith.subf %224, %218 : vector<8x32xf32>
    %226 = arith.mulf %225, %223 : vector<8x32xf32>
    %227 = arith.mulf %218, %198 : vector<8x32xf32>
    %228 = arith.addf %226, %227 : vector<8x32xf32>
    %229 = vector.extract_strided_slice %17 {offsets = [56, 0], sizes = [8, 96], strides = [1, 1]} : vector<64x96xf32> to vector<8x96xf32>
    %cst_37 = arith.constant dense<0.000000e+00> : vector<8x96xf32>
    %230 = tpu.matmul %228, %1, %cst_37 {dimension_numbers = #tpu.dot_dimension_numbers<[1], [0], [0], [1], [0, 0, 1, 1], [], []>} : vector<8x32xf32>, vector<32x96xf32>, vector<8x96xf32> -> vector<8x96xf32>
    %231 = vector.broadcast %2 : vector<1x96xf32> to vector<8x96xf32>
    %232 = arith.addf %230, %231 : vector<8x96xf32>
    %233 = vector.extract_strided_slice %229 {offsets = [0, 0], sizes = [8, 32], strides = [1, 1]} : vector<8x96xf32> to vector<8x32xf32>
    %234 = vector.extract_strided_slice %232 {offsets = [0, 0], sizes = [8, 32], strides = [1, 1]} : vector<8x96xf32> to vector<8x32xf32>
    %235 = arith.addf %233, %234 : vector<8x32xf32>
    %236 = arith.negf %235 : vector<8x32xf32>
    %237 = math.exp %236 : vector<8x32xf32>
    %cst_38 = arith.constant 1.000000e+00 : f32
    %238 = vector.broadcast %cst_38 : f32 to vector<8x32xf32>
    %239 = arith.addf %238, %237 : vector<8x32xf32>
    %240 = arith.divf %238, %239 : vector<8x32xf32>
    %241 = vector.extract_strided_slice %229 {offsets = [0, 32], sizes = [8, 32], strides = [1, 1]} : vector<8x96xf32> to vector<8x32xf32>
    %242 = vector.extract_strided_slice %232 {offsets = [0, 32], sizes = [8, 32], strides = [1, 1]} : vector<8x96xf32> to vector<8x32xf32>
    %243 = arith.addf %241, %242 : vector<8x32xf32>
    %244 = arith.negf %243 : vector<8x32xf32>
    %245 = math.exp %244 : vector<8x32xf32>
    %cst_39 = arith.constant 1.000000e+00 : f32
    %246 = vector.broadcast %cst_39 : f32 to vector<8x32xf32>
    %247 = arith.addf %246, %245 : vector<8x32xf32>
    %248 = arith.divf %246, %247 : vector<8x32xf32>
    %249 = vector.extract_strided_slice %229 {offsets = [0, 64], sizes = [8, 32], strides = [1, 1]} : vector<8x96xf32> to vector<8x32xf32>
    %250 = vector.extract_strided_slice %232 {offsets = [0, 64], sizes = [8, 32], strides = [1, 1]} : vector<8x96xf32> to vector<8x32xf32>
    %251 = arith.mulf %240, %250 : vector<8x32xf32>
    %252 = arith.addf %249, %251 : vector<8x32xf32>
    %253 = math.tanh %252 : vector<8x32xf32>
    %cst_40 = arith.constant 1.000000e+00 : f32
    %254 = vector.broadcast %cst_40 : f32 to vector<8x32xf32>
    %255 = arith.subf %254, %248 : vector<8x32xf32>
    %256 = arith.mulf %255, %253 : vector<8x32xf32>
    %257 = arith.mulf %248, %228 : vector<8x32xf32>
    %258 = arith.addf %256, %257 : vector<8x32xf32>
    %259 = vector.broadcast %3 : vector<1x32xf32> to vector<8x32xf32>
    %260 = arith.mulf %258, %259 : vector<8x32xf32>
    %cst_41 = arith.constant dense<0.000000e+00> : vector<8xf32>
    %261 = vector.multi_reduction <add>, %260, %cst_41 [1] : vector<8x32xf32> to vector<8xf32>
    %262 = vector.shape_cast %261 : vector<8xf32> to vector<8x1xf32>
    %263 = vector.broadcast %4 : vector<1x1xf32> to vector<8x1xf32>
    %264 = arith.addf %262, %263 : vector<8x1xf32>
    %265 = vector.extract_strided_slice %264 {offsets = [0, 0], sizes = [2, 1], strides = [1, 1]} : vector<8x1xf32> to vector<2x1xf32>
    %266 = arith.negf %265 : vector<2x1xf32>
    %267 = math.exp %266 : vector<2x1xf32>
    %cst_42 = arith.constant 1.000000e+00 : f32
    %268 = vector.broadcast %cst_42 : f32 to vector<2x1xf32>
    %269 = arith.addf %268, %267 : vector<2x1xf32>
    %270 = arith.divf %268, %269 : vector<2x1xf32>
    %c0_43 = arith.constant 0 : index
    %c0_44 = arith.constant 0 : index
    %271 = vector.load %arg2[%c0_43, %c0_44] : memref<2x1xf32, #tpu.memory_space<vmem>>, vector<2x1xf32>
    tpu.vector_store %arg2[%c0_43, %c0_44], %270 {strides = array<i32>} : memref<2x1xf32, #tpu.memory_space<vmem>>, vector<2x1xf32>,
    return
  }
}

</mosaic_0001>

<bundles_post_ra>
// kernel: scannet_forward.1
= control target key start
LH: loop header
LB: loop body
LE: loop exit
PB: predicated region body
PF: predicated region fallthrough
CT: control target
= control target key end

     0   :  { %v1480_v0 = vmov 0   ;;  %v1481_v9 = vmov 0.0|0.0   ;;  %vm1482_vm0 = vmmov 0   ;;  %v1483_v11 = vmov 0.0   ;;  %s1485_s23 = smov 64   ;;  %s1486_s24 = smov 96   ;;  %s1745_s0 = inlined_call_operand.vmem [shape: s32[64,2], index: 0, kind: input, shape index: {}]   ;;  %s1746_s1 = inlined_call_operand.vmem [shape: f32[152,96], index: 1, kind: input, shape index: {}]   ;;  %s1747_s2 = inlined_call_operand.vmem [shape: f32[2,1], index: 2, kind: output, shape index: {}]  }
   0x1   :  { %1421 = vset.pattern.permute.xlu1 %v1480_v0  ;;  %1419 = vset.pattern.permute.xlu0 %v1480_v0  ;;  %v32_v1 = vld [vmem:[%s1745_s0 + $0x8] sm:$0xff]  ;;  %v31_v2 = vld [vmem:[%s1745_s0] sm:$0xff]  ;;  %v25_v3 = vld [vmem:[%s1746_s1 + $0x70] sm:$0xff]  ;;  %v1484_v18 = vmov 1   ;;  %v39_v35 = vlaneseq  ;;  %vm137_vm6 = vcmask 916480   ;;  %vm271_vm8 = vcmask 261120  }
   0x2   :  { %45 = vperm.xlu1 %1421, %v32_v1   ;;  %42 = vperm.xlu0 %1419, %v31_v2   ;;  %v26_v4 = vld [vmem:[%s1746_s1 + $0x78] sm:$0xff]  ;;  %v27_v5 = vld [vmem:[%s1746_s1 + $0x80] sm:$0xff]  ;;  %v28_v6 = vld [vmem:[%s1746_s1 + $0x88] sm:$0xff]  ;;  %v74_v7 = vadd.s32 56, %v32_v1  ;;  %v73_v8 = vadd.s32 56, %v31_v2  ;;  %s1487_s10 = smov 32  }
   0x3   :  { %1363 = vmatprep.subr.bf16.mxu1 %v1481_v9  ;;  %v1524_v10 = vpack.c.bf16 %v26_v4, %v25_v3  ;;  %1255 = vmatprep.mubr.msk.f32.mxu1 %vm1482_vm0, %v1483_v11  ;;  %v11_v12 = vld [vmem:[%s1746_s1] sm:$0xff]  ;;  %v12_v13 = vld [vmem:[%s1746_s1 + $0x8] sm:$0xff]  ;;  %v13_v14 = vld [vmem:[%s1746_s1 + $0x10] sm:$0xff]  ;;  %v1541_v17 = vpack.c.bf16 %v28_v6, %v27_v5  ;;  %v1587_v38 = vand.u32 127, %v39_v35 }
   0x4   :  { %v1335_v15 = vpack.c.bf16 %v12_v13, %v11_v12  ;;  %v14_v16 = vld [vmem:[%s1746_s1 + $0x18] sm:$0xff]  ;;  %v15_v20 = vld [vmem:[%s1746_s1 + $0x20] sm:$0xff]  ;;  %v16_v21 = vld [vmem:[%s1746_s1 + $0x28] sm:$0xff] }
   0x5   :  { %1365 = vmatpush3.bf16.msra.mxu1 %v1524_v10  ;;  %v1339_v19 = vpack.c.bf16 %v14_v16, %v13_v14  ;;  %v1343_v22 = vpack.c.bf16 %v16_v21, %v15_v20  ;;  %v17_v23 = vld [vmem:[%s1746_s1 + $0x30] sm:$0xff]  ;;  %v18_v24 = vld [vmem:[%s1746_s1 + $0x38] sm:$0xff]  ;;  %v19_v26 = vld [vmem:[%s1746_s1 + $0x40] sm:$0xff] }
   0x6   :  { %1422 = vset.pattern.permute.xlu1 %v1484_v18  ;;  %1420 = vset.pattern.permute.xlu0 %v1484_v18  ;;  %v1347_v25 = vpack.c.bf16 %v18_v24, %v17_v23  ;;  %v20_v27 = vld [vmem:[%s1746_s1 + $0x48] sm:$0xff]  ;;  %v21_v29 = vld [vmem:[%s1746_s1 + $0x50] sm:$0xff]  ;;  %v22_v30 = vld [vmem:[%s1746_s1 + $0x58] sm:$0xff] }
   0x7   :  { %85 = vperm.xlu1 %1422, %v74_v7   ;;  %82 = vperm.xlu0 %1420, %v73_v8   ;;  %v1351_v28 = vpack.c.bf16 %v20_v27, %v19_v26  ;;  %v1355_v31 = vpack.c.bf16 %v22_v30, %v21_v29  ;;  %v23_v32 = vld [vmem:[%s1746_s1 + $0x60] sm:$0xff]  ;;  %v24_v33 = vld [vmem:[%s1746_s1 + $0x68] sm:$0xff]  ;;  %v1604_v43 = vld [vmem:[%s1746_s1 + $0x90] ss:$0 sm:$0xff] }
   0x8   :  { %1366 = vmatprep.subr.bf16.mxu1 %v1481_v9  ;;  %1336 = vmatprep.subr.bf16.mxu0 %v1335_v15  ;;  %v1359_v34 = vpack.c.bf16 %v24_v33, %v23_v32  ;;  %v33_v20 = vld [vmem:[%s1745_s0 + $0x10] sm:$0xff]  ;;  %v34_v21 = vld [vmem:[%s1745_s0 + $0x18] sm:$0xff] }
   0x9   :  { %1368 = vmatpush3.bf16.msra.mxu1 %v1541_v17  ;;  %1338 = vmatpush3.bf16.msra.mxu0 %v1335_v15  ;;  %v75_v27 = vadd.s32 56, %v33_v20 }
   0xa   :  { %1340 = vmatprep.subr.bf16.mxu0 %v1339_v19  ;;  %1369 = vmatprep.subr.bf16.mxu1 %v1481_v9 }
   0xb   :  { %1423 = vset.pattern.permute.xlu1 %v1480_v0 }
   0xc   :  { %1256 = vmatmul.mubr.f32.vlgmr.msra.gmra.mrb[0].mxu1 %v1483_v11 }
   0xd   :  { %1342 = vmatpush3.bf16.msra.mxu0 %v1339_v19  ;;  %1371 = vmatpush3.bf16.msra.mxu1 %v1524_v10 }
   0xe   :  { %1344 = vmatprep.subr.bf16.mxu0 %v1343_v22  ;;  %1372 = vmatprep.subr.bf16.mxu1 %v1481_v9 }
   0xf   :  { %1266 = vmatprep.mubr.msk.f32.mxu1 %vm1482_vm0, %v1483_v11 }
  0x11   :  { %1346 = vmatpush3.bf16.msra.mxu0 %v1343_v22  ;;  %1374 = vmatpush3.bf16.msra.mxu1 %v1541_v17 }
  0x12   :  { %1348 = vmatprep.subr.bf16.mxu0 %v1347_v25  ;;  %1375 = vmatprep.subr.bf16.mxu1 %v1481_v9 }
  0x15   :  { %1350 = vmatpush3.bf16.msra.mxu0 %v1347_v25 }
  0x16   :  { %1352 = vmatprep.subr.bf16.mxu0 %v1351_v28 }
  0x19   :  { %1354 = vmatpush3.bf16.msra.mxu0 %v1351_v28  ;;  %v76_v28 = vadd.s32 56, %v34_v21 }
  0x1a   :  { %1356 = vmatprep.subr.bf16.mxu0 %v1355_v31 }
  0x1d   :  { %1358 = vmatpush3.bf16.msra.mxu0 %v1355_v31 }
  0x1e   :  { %1360 = vmatprep.subr.bf16.mxu0 %v1359_v34 }
  0x21   :  { %1362 = vmatpush3.bf16.msra.mxu0 %v1359_v34 }
  0x22   :  { %1393 = vmatprep.subr.bf16.mxu0 %v1481_v9 }
  0x81   :  { %v43_v36 = vpop.permute.xlu0 %42  ;;  %v46_v37 = vpop.permute.xlu1 %45 }
  0x82   :  { %vm66_vm1 = vcmp.eq.s32.totalorder %v1587_v38, %v46_v37  ;;  %vm65_vm4 = vcmp.eq.s32.totalorder %v1587_v38, %v43_v36 }
  0x86   :  { %v86_v39 = vpop.permute.xlu1 %85  ;;  %v83_v40 = vpop.permute.xlu0 %82 }
  0x87   :  { %vm106_vm2 = vcmp.eq.s32.totalorder %v1587_v38, %v86_v39  ;;  %vm105_vm3 = vcmp.eq.s32.totalorder %v1587_v38, %v83_v40 }
  0x88   :  { %vm114_vm5 = vmor %vm66_vm1, %vm106_vm2 }
  0x89   :  { %v1112_v41 = vsel %vm114_vm5, 1.0, %v1483_v11  ;;  %vm113_vm7 = vmor %vm65_vm4, %vm105_vm3 }
  0x8a   :  { %v1111_v42 = vsel %vm113_vm7, 1.0, %v1483_v11 }
  0x8b   :  { %1235 = vmatprep.mubr.msk.f32.mxu0 %vm137_vm6, %v1111_v42 }
  0x8c   :  { %1236 = vmatmul.mubr.msk.f32.vlgmr.msra.gmra.mrb[0].mxu0 %vm137_vm6, %v1112_v41 }
  0x8d   :  { %1395 = vmatpush3.bf16.msra.mxu0 %v1524_v10 }
  0x8e   :  { %1396 = vmatprep.subr.bf16.mxu0 %v1481_v9 }
  0x91   :  { %1398 = vmatpush3.bf16.msra.mxu0 %v1541_v17 }
  0x92   :  { %1405 = vmatprep.subr.bf16.mxu0 %v1481_v9 }
  0xdf   :  { %v341_v44 = vpop.f32.mrb[0].mxu1 }
  0xe0   :  { %v342_v45 = vadd.f32 %v1604_v43, %v341_v44  ;;  %v1257_v46 = vpop.f32.mrb[1].mxu1 }
  0xe2   :  { %353 = vrot.lane.b32.xlu1 %v342_v45, %s1485_s23 }
 0x154   :  { %v354_v53 = vpop.permute.xlu1 %353 }
 0x15f   :  { %v1237_v47 = vpop.f32.mrb[0].mxu0 }
 0x160   :  { %v228_v48 = vpop.f32.mrb[1].mxu0 }
 0x161   :  { %v345_v49 = vadd.f32 %v342_v45, %v228_v48 }
 0x163   :  { %v1128_v50 = vmul.f32 -1.442695, %v345_v49 }
 0x165   :  { %1428 = vpow2.f32 %v1128_v50 }
 0x16f   :  { %v1429_v51 = vpop.eup %1428 }
 0x170   :  { %v349_v52 = vadd.f32 1.0, %v1429_v51 }
 0x172   :  { %1430 = vrcp.f32 %v349_v52 }
 0x17c   :  { %v1431_v54 = vpop.eup %1430 }
 0x17d   :  { %v356_v55 = vmul.f32 %v1431_v54, %v354_v53  ;;  %v363_v59 = vsub.f32 1.0, %v1431_v54  ;;  %v369_v61 = vmul.f32 0.0, %v1431_v54 }
 0x17f   :  { %358 = vrot.lane.b32.xlu0 %v356_v55, %s1485_s23 }
 0x1f1   :  { %v359_v56 = vpop.permute.xlu0 %358 }
 0x1f2   :  { %v361_v57 = vadd.f32 %v359_v56, %v228_v48 }
 0x1f4   :  { %1432 = vtanh.f32 %v361_v57 }
 0x1fe   :  { %v1433_v58 = vpop.eup %1432 }
 0x1ff   :  { %365 = vrot.lane.b32.xlu1 %v1433_v58, %s1486_s24 }
 0x271   :  { %v366_v60 = vpop.permute.xlu1 %365 }
 0x272   :  { %v368_v62 = vmul.f32 %v366_v60, %v363_v59 }
 0x274   :  { %v370_v63 = vadd.f32 %v369_v61, %v368_v62 }
 0x276   :  { %372 = vrot.lane.b32.xlu0 %v370_v63, %s1486_s24 }
 0x2e8   :  { %v373_v1 = vpop.permute.xlu0 %372 }
 0x2e9   :  { %1267 = vmatmul.mubr.msk.f32.vlgmr.msra.gmra.mrb[2].mxu1 %vm271_vm8, %v373_v1 }
 0x2ea   :  { %1377 = vmatpush3.bf16.msra.mxu1 %v1524_v10  ;;  %1277 = vmatprep.mubr.msk.f32.mxu1 %vm1482_vm0, %v1483_v11 }
 0x2eb   :  { %1378 = vmatprep.subr.bf16.mxu1 %v1481_v9 }
 0x2ee   :  { %1380 = vmatpush3.bf16.msra.mxu1 %v1541_v17 }
 0x2ef   :  { %1381 = vmatprep.subr.bf16.mxu1 %v1481_v9 }
 0x3bc   :  { %v442_v2 = vpop.f32.mrb[2].mxu1 }
 0x3bd   :  { %v443_v3 = vadd.f32 %v1604_v43, %v442_v2  ;;  %v1268_v4 = vpop.f32.mrb[3].mxu1 }
 0x3bf   :  { %v446_v5 = vadd.f32 %v1237_v47, %v443_v3  ;;  %454 = vrot.lane.b32.xlu1 %v443_v3, %s1485_s23 }
 0x3c1   :  { %v1130_v6 = vmul.f32 -1.442695, %v446_v5 }
 0x3c3   :  { %1434 = vpow2.f32 %v1130_v6 }
 0x3cd   :  { %v1435_v7 = vpop.eup %1434 }
 0x3ce   :  { %v450_v8 = vadd.f32 1.0, %v1435_v7 }
 0x3d0   :  { %1436 = vrcp.f32 %v450_v8 }
 0x3da   :  { %v1437_v12 = vpop.eup %1436 }
 0x3db   :  { %v464_v22 = vsub.f32 1.0, %v1437_v12  ;;  %v470_v24 = vmul.f32 %v1437_v12, %v370_v63 }
 0x431   :  { %v455_v13 = vpop.permute.xlu1 %454 }
 0x432   :  { %v457_v14 = vmul.f32 %v1437_v12, %v455_v13  ;;  %v35_v12 = vld [vmem:[%s1745_s0 + $0x20] sm:$0xff]  ;;  %v36_v13 = vld [vmem:[%s1745_s0 + $0x28] sm:$0xff] }
 0x434   :  { %459 = vrot.lane.b32.xlu0 %v457_v14, %s1485_s23 }
 0x4a6   :  { %v460_v15 = vpop.permute.xlu0 %459 }
 0x4a7   :  { %v462_v16 = vadd.f32 %v1237_v47, %v460_v15 }
 0x4a9   :  { %1438 = vtanh.f32 %v462_v16 }
 0x4b3   :  { %v1439_v19 = vpop.eup %1438 }
 0x4b4   :  { %466 = vrot.lane.b32.xlu1 %v1439_v19, %s1486_s24 }
 0x4b8   :  { %48 = vperm.xlu1 %1423, %v33_v20  }
 0x4bc   :  { %51 = vperm.xlu1 %1423, %v34_v21   ;;  %v77_v21 = vadd.s32 56, %v35_v12 }
 0x526   :  { %v467_v23 = vpop.permute.xlu1 %466 }
 0x527   :  { %v469_v25 = vmul.f32 %v467_v23, %v464_v22  ;;  %v78_v22 = vadd.s32 56, %v36_v13 }
 0x529   :  { %v471_v26 = vadd.f32 %v470_v24, %v469_v25 }
 0x52b   :  { %473 = vrot.lane.b32.xlu0 %v471_v26, %s1486_s24 }
 0x52f   :  { %88 = vperm.xlu0 %1420, %v75_v27  }
 0x533   :  { %91 = vperm.xlu0 %1420, %v76_v28  }
 0x537   :  { %v49_v30 = vpop.permute.xlu1 %48 }
 0x538   :  { %vm67_vm9 = vcmp.eq.s32.totalorder %v1587_v38, %v49_v30 }
 0x53b   :  { %v52_v32 = vpop.permute.xlu1 %51 }
 0x53c   :  { %vm68_vm12 = vcmp.eq.s32.totalorder %v1587_v38, %v52_v32 }
 0x59d   :  { %v474_v29 = vpop.permute.xlu0 %473 }
 0x59e   :  { %1278 = vmatmul.mubr.msk.f32.vlgmr.msra.gmra.mrb[4].mxu1 %vm271_vm8, %v474_v29 }
 0x59f   :  { %1383 = vmatpush3.bf16.msra.mxu1 %v1524_v10  ;;  %1288 = vmatprep.mubr.msk.f32.mxu1 %vm1482_vm0, %v1483_v11 }
 0x5a0   :  { %1384 = vmatprep.subr.bf16.mxu1 %v1481_v9 }
 0x5a3   :  { %1386 = vmatpush3.bf16.msra.mxu1 %v1541_v17 }
 0x5a4   :  { %1387 = vmatprep.subr.bf16.mxu1 %v1481_v9 }
 0x5ae   :  { %v89_v31 = vpop.permute.xlu0 %88 }
 0x5af   :  { %vm107_vm10 = vcmp.eq.s32.totalorder %v1587_v38, %v89_v31 }
 0x5b0   :  { %vm115_vm11 = vmor %vm67_vm9, %vm107_vm10 }
 0x5b1   :  { %v1113_v33 = vsel %vm115_vm11, 1.0, %v1483_v11 }
 0x5b2   :  { %v92_v34 = vpop.permute.xlu0 %91  ;;  %1238 = vmatprep.mubr.msk.f32.mxu0 %vm137_vm6, %v1113_v33 }
 0x5b3   :  { %vm108_vm13 = vcmp.eq.s32.totalorder %v1587_v38, %v92_v34 }
 0x5b4   :  { %vm116_vm14 = vmor %vm68_vm12, %vm108_vm13 }
 0x5b5   :  { %v1114_v35 = vsel %vm116_vm14, 1.0, %v1483_v11 }
 0x5b6   :  { %1239 = vmatmul.mubr.msk.f32.gmra.mrb[2].mxu0 %vm137_vm6, %v1114_v35 }
 0x671   :  { %v543_v36 = vpop.f32.mrb[4].mxu1 }
 0x672   :  { %v544_v37 = vadd.f32 %v1604_v43, %v543_v36  ;;  %v1279_v39 = vpop.f32.mrb[5].mxu1 }
 0x674   :  { %555 = vrot.lane.b32.xlu1 %v544_v37, %s1485_s23 }
 0x689   :  { %v1240_v40 = vpop.f32.mrb[2].mxu0 }
 0x68a   :  { %v238_v41 = vpop.f32.mrb[3].mxu0 }
 0x68b   :  { %v547_v42 = vadd.f32 %v544_v37, %v238_v41 }
 0x68d   :  { %v1132_v44 = vmul.f32 -1.442695, %v547_v42 }
 0x68f   :  { %1440 = vpow2.f32 %v1132_v44  ;;  %v37_v44 = vld [vmem:[%s1745_s0 + $0x30] sm:$0xff] }
 0x699   :  { %v1441_v45 = vpop.eup %1440 }
 0x69a   :  { %v551_v46 = vadd.f32 1.0, %v1441_v45  ;;  %v38_v45 = vld [vmem:[%s1745_s0 + $0x38] sm:$0xff] }
 0x69c   :  { %1442 = vrcp.f32 %v551_v46  ;;  %v80_v46 = vadd.s32 56, %v38_v45 }
 0x6a6   :  { %v1443_v47 = vpop.eup %1442 }
 0x6a7   :  { %v565_v53 = vsub.f32 1.0, %v1443_v47  ;;  %v571_v55 = vmul.f32 %v1443_v47, %v471_v26 }
 0x6e6   :  { %v556_v48 = vpop.permute.xlu1 %555 }
 0x6e7   :  { %v558_v49 = vmul.f32 %v1443_v47, %v556_v48 }
 0x6e9   :  { %560 = vrot.lane.b32.xlu0 %v558_v49, %s1485_s23 }
 0x75b   :  { %v561_v50 = vpop.permute.xlu0 %560 }
 0x75c   :  { %v563_v51 = vadd.f32 %v561_v50, %v238_v41  ;;  %v79_v50 = vadd.s32 56, %v37_v44 }
 0x75e   :  { %1444 = vtanh.f32 %v563_v51 }
 0x768   :  { %v1445_v52 = vpop.eup %1444 }
 0x769   :  { %567 = vrot.lane.b32.xlu1 %v1445_v52, %s1486_s24 }
 0x7db   :  { %v568_v54 = vpop.permute.xlu1 %567 }
 0x7dc   :  { %v570_v56 = vmul.f32 %v568_v54, %v565_v53 }
 0x7de   :  { %v572_v57 = vadd.f32 %v571_v55, %v570_v56 }
 0x7e0   :  { %574 = vrot.lane.b32.xlu0 %v572_v57, %s1486_s24 }
 0x852   :  { %v575_v58 = vpop.permute.xlu0 %574 }
 0x853   :  { %1289 = vmatmul.mubr.msk.f32.vlgmr.msra.gmra.mrb[6].mxu1 %vm271_vm8, %v575_v58 }
 0x854   :  { %1389 = vmatpush3.bf16.msra.mxu1 %v1524_v10  ;;  %1299 = vmatprep.mubr.msk.f32.mxu1 %vm1482_vm0, %v1483_v11 }
 0x855   :  { %1390 = vmatprep.subr.bf16.mxu1 %v1481_v9 }
 0x858   :  { %1392 = vmatpush3.bf16.msra.mxu1 %v1541_v17 }
 0x859   :  { %1399 = vmatprep.subr.bf16.mxu1 %v1481_v9 }
 0x926   :  { %v644_v59 = vpop.f32.mrb[6].mxu1 }
 0x927   :  { %v645_v60 = vadd.f32 %v1604_v43, %v644_v59  ;;  %v1290_v61 = vpop.f32.mrb[7].mxu1 }
 0x929   :  { %v648_v62 = vadd.f32 %v1240_v40, %v645_v60  ;;  %656 = vrot.lane.b32.xlu1 %v645_v60, %s1485_s23 }
 0x92b   :  { %v1134_v63 = vmul.f32 -1.442695, %v648_v62 }
 0x92d   :  { %1446 = vpow2.f32 %v1134_v63 }
 0x937   :  { %v1447_v1 = vpop.eup %1446 }
 0x938   :  { %v652_v2 = vadd.f32 1.0, %v1447_v1 }
 0x93a   :  { %1448 = vrcp.f32 %v652_v2 }
 0x944   :  { %v1449_v3 = vpop.eup %1448 }
 0x945   :  { %v666_v14 = vsub.f32 1.0, %v1449_v3  ;;  %v672_v16 = vmul.f32 %v1449_v3, %v572_v57 }
 0x99b   :  { %v657_v4 = vpop.permute.xlu1 %656 }
 0x99c   :  { %v659_v5 = vmul.f32 %v1449_v3, %v657_v4 }
 0x99e   :  { %661 = vrot.lane.b32.xlu0 %v659_v5, %s1485_s23 }
 0xa10   :  { %v662_v6 = vpop.permute.xlu0 %661 }
 0xa11   :  { %v664_v7 = vadd.f32 %v1240_v40, %v662_v6 }
 0xa13   :  { %1450 = vtanh.f32 %v664_v7 }
 0xa1d   :  { %v1451_v8 = vpop.eup %1450 }
 0xa1e   :  { %668 = vrot.lane.b32.xlu1 %v1451_v8, %s1486_s24 }
 0xa22   :  { %54 = vperm.xlu1 %1423, %v35_v12  }
 0xa26   :  { %57 = vperm.xlu1 %1423, %v36_v13  }
 0xa2a   :  { %1425 = vset.pattern.permute.xlu1 %v1484_v18 }
 0xa90   :  { %v669_v15 = vpop.permute.xlu1 %668 }
 0xa91   :  { %v671_v19 = vmul.f32 %v669_v15, %v666_v14 }
 0xa93   :  { %v673_v20 = vadd.f32 %v672_v16, %v671_v19 }
 0xa95   :  { %675 = vrot.lane.b32.xlu0 %v673_v20, %s1486_s24 }
 0xa99   :  { %94 = vperm.xlu0 %1420, %v77_v21  }
 0xa9d   :  { %97 = vperm.xlu0 %1420, %v78_v22  }
 0xaa1   :  { %1424 = vset.pattern.permute.xlu0 %v1480_v0  ;;  %v55_v24 = vpop.permute.xlu1 %54 }
 0xaa2   :  { %vm69_vm15 = vcmp.eq.s32.totalorder %v1587_v38, %v55_v24 }
 0xaa5   :  { %v58_v26 = vpop.permute.xlu1 %57 }
 0xaa6   :  { %vm70_vm3 = vcmp.eq.s32.totalorder %v1587_v38, %v58_v26 }
 0xb07   :  { %v676_v23 = vpop.permute.xlu0 %675 }
 0xb08   :  { %1300 = vmatmul.mubr.msk.f32.vlgmr.msra.gmra.mrb[8].mxu1 %vm271_vm8, %v676_v23 }
 0xb09   :  { %1401 = vmatpush3.bf16.msra.mxu1 %v1524_v10  ;;  %1321 = vmatprep.mubr.msk.f32.mxu1 %vm1482_vm0, %v1483_v11 }
 0xb0a   :  { %1402 = vmatprep.subr.bf16.mxu1 %v1481_v9 }
 0xb0d   :  { %1404 = vmatpush3.bf16.msra.mxu1 %v1541_v17 }
 0xb18   :  { %v95_v25 = vpop.permute.xlu0 %94 }
 0xb19   :  { %vm109_vm1 = vcmp.eq.s32.totalorder %v1587_v38, %v95_v25 }
 0xb1a   :  { %vm117_vm2 = vmor %vm69_vm15, %vm109_vm1 }
 0xb1b   :  { %v1115_v27 = vsel %vm117_vm2, 1.0, %v1483_v11 }
 0xb1c   :  { %v98_v28 = vpop.permute.xlu0 %97  ;;  %1241 = vmatprep.mubr.msk.f32.mxu0 %vm137_vm6, %v1115_v27 }
 0xb1d   :  { %vm110_vm4 = vcmp.eq.s32.totalorder %v1587_v38, %v98_v28 }
 0xb1e   :  { %vm118_vm5 = vmor %vm70_vm3, %vm110_vm4 }
 0xb1f   :  { %v1116_v29 = vsel %vm118_vm5, 1.0, %v1483_v11 }
 0xb20   :  { %1242 = vmatmul.mubr.msk.f32.gmra.mrb[4].mxu0 %vm137_vm6, %v1116_v29 }
 0xbdb   :  { %v745_v30 = vpop.f32.mrb[8].mxu1 }
 0xbdc   :  { %v746_v31 = vadd.f32 %v1604_v43, %v745_v30  ;;  %v1301_v32 = vpop.f32.mrb[9].mxu1 }
 0xbde   :  { %757 = vrot.lane.b32.xlu1 %v746_v31, %s1485_s23 }
 0xbf3   :  { %v1685_v33 = vpop.f32.mrb[4].mxu0 }
 0xbf4   :  { %v248_v34 = vpop.f32.mrb[5].mxu0 }
 0xbf5   :  { %v749_v35 = vadd.f32 %v746_v31, %v248_v34 }
 0xbf7   :  { %v1136_v36 = vmul.f32 -1.442695, %v749_v35 }
 0xbf9   :  { %1452 = vpow2.f32 %v1136_v36 }
 0xc03   :  { %v1453_v37 = vpop.eup %1452 }
 0xc04   :  { %v753_v39 = vadd.f32 1.0, %v1453_v37 }
 0xc06   :  { %1454 = vrcp.f32 %v753_v39 }
 0xc10   :  { %v1455_v40 = vpop.eup %1454 }
 0xc11   :  { %v767_v51 = vsub.f32 1.0, %v1455_v40 }
 0xc50   :  { %v758_v41 = vpop.permute.xlu1 %757 }
 0xc51   :  { %v760_v42 = vmul.f32 %v1455_v40, %v758_v41 }
 0xc53   :  { %762 = vrot.lane.b32.xlu0 %v760_v42, %s1485_s23 }
 0xc57   :  { %60 = vperm.xlu0 %1424, %v37_v44  }
 0xc5b   :  { %1427 = vset.pattern.permute.xlu0 %v1484_v18  ;;  %v773_v18 = vmul.f32 %v1455_v40, %v673_v20 }
 0xc5c   :  { %103 = vperm.xlu0 %1427, %v80_v46  }
 0xcc5   :  { %v763_v47 = vpop.permute.xlu0 %762 }
 0xcc6   :  { %v765_v48 = vadd.f32 %v763_v47, %v248_v34 }
 0xcc8   :  { %1456 = vtanh.f32 %v765_v48 }
 0xcd2   :  { %v1457_v49 = vpop.eup %1456 }
 0xcd3   :  { %769 = vrot.lane.b32.xlu1 %v1457_v49, %s1486_s24 }
 0xcd6   :  { %v61_v55 = vpop.permute.xlu0 %60 }
 0xcd7   :  { %100 = vperm.xlu1 %1425, %v79_v50   ;;  %vm71_vm7 = vcmp.eq.s32.totalorder %v1587_v38, %v61_v55  ;;  %v1143_v50 = vld [vmem:[%s1746_s1 + $0x91] ss:$0 sm:$0xff] }
 0xcdb   :  { %1426 = vset.pattern.permute.xlu1 %v1480_v0  ;;  %v104_v57 = vpop.permute.xlu0 %103 }
 0xcdc   :  { %63 = vperm.xlu1 %1426, %v38_v45   ;;  %vm112_vm11 = vcmp.eq.s32.totalorder %v1587_v38, %v104_v57 }
 0xd45   :  { %v770_v52 = vpop.permute.xlu1 %769 }
 0xd46   :  { %v772_v53 = vmul.f32 %v770_v52, %v767_v51 }
 0xd48   :  { %v774_v54 = vadd.f32 %v773_v18, %v772_v53 }
 0xd4a   :  { %776 = vrot.lane.b32.xlu1 %v774_v54, %s1486_s24 }
 0xd56   :  { %v101_v56 = vpop.permute.xlu1 %100 }
 0xd57   :  { %vm111_vm9 = vcmp.eq.s32.totalorder %v1587_v38, %v101_v56 }
 0xd58   :  { %vm119_vm10 = vmor %vm71_vm7, %vm111_vm9 }
 0xd59   :  { %v1117_v58 = vsel %vm119_vm10, 1.0, %v1483_v11 }
 0xd5a   :  { %1244 = vmatprep.mubr.msk.f32.mxu0 %vm137_vm6, %v1117_v58 }
 0xd5b   :  { %v64_v0 = vpop.permute.xlu1 %63 }
 0xd5c   :  { %vm72_vm12 = vcmp.eq.s32.totalorder %v1587_v38, %v64_v0 }
 0xd5d   :  { %vm120_vm13 = vmor %vm72_vm12, %vm112_vm11 }
 0xd5e   :  { %v1118_v59 = vsel %vm120_vm13, 1.0, %v1483_v11 }
 0xd5f   :  { %1245 = vmatmul.mubr.msk.f32.gmra.mrb[6].mxu0 %vm137_vm6, %v1118_v59 }
 0xd60   :  { %1310 = vmatprep.mubr.msk.f32.mxu0 %vm1482_vm0, %v1483_v11 }
 0xdbc   :  { %v777_v60 = vpop.permute.xlu1 %776 }
 0xdbd   :  { %1311 = vmatmul.mubr.msk.f32.vlgmr.msra.gmra.mrb[8].mxu0 %vm271_vm8, %v777_v60 }
 0xdbe   :  { %1407 = vmatpush3.bf16.msra.mxu0 %v1524_v10  ;;  %1332 = vmatprep.mubr.msk.f32.mxu0 %vm1482_vm0, %v1483_v11  ;;  %vm1105_vm0 = vcmask 1024  }
 0xdbf   :  { %1408 = vmatprep.subr.bf16.mxu0 %v1481_v9 }
 0xdc2   :  { %1410 = vmatpush3.bf16.msra.mxu0 %v1541_v17 }
 0xe32   :  { %v1714_v38 = vpop.f32.mrb[6].mxu0 }
 0xe33   :  { %v258_v61 = vpop.f32.mrb[7].mxu0 }
 0xe90   :  { %v846_v62 = vpop.f32.mrb[8].mxu0 }
 0xe91   :  { %v847_v63 = vadd.f32 %v1604_v43, %v846_v62  ;;  %v1312_v1 = vpop.f32.mrb[9].mxu0 }
 0xe93   :  { %v850_v2 = vadd.f32 %v1685_v33, %v847_v63  ;;  %858 = vrot.lane.b32.xlu1 %v847_v63, %s1485_s23 }
 0xe95   :  { %v1138_v3 = vmul.f32 -1.442695, %v850_v2 }
 0xe97   :  { %1458 = vpow2.f32 %v1138_v3 }
 0xea1   :  { %v1459_v10 = vpop.eup %1458 }
 0xea2   :  { %v854_v4 = vadd.f32 1.0, %v1459_v10 }
 0xea4   :  { %1460 = vrcp.f32 %v854_v4 }
 0xeae   :  { %v1461_v11 = vpop.eup %1460 }
 0xeaf   :  { %v868_v8 = vsub.f32 1.0, %v1461_v11  ;;  %v874_v13 = vmul.f32 %v1461_v11, %v774_v54 }
 0xf05   :  { %v859_v9 = vpop.permute.xlu1 %858 }
 0xf06   :  { %v861_v5 = vmul.f32 %v1461_v11, %v859_v9 }
 0xf08   :  { %863 = vrot.lane.b32.xlu0 %v861_v5, %s1485_s23 }
 0xf7a   :  { %v864_v17 = vpop.permute.xlu0 %863 }
 0xf7b   :  { %v866_v6 = vadd.f32 %v1685_v33, %v864_v17 }
 0xf7d   :  { %1462 = vtanh.f32 %v866_v6 }
 0xf87   :  { %v1463_v7 = vpop.eup %1462 }
 0xf88   :  { %870 = vrot.lane.b32.xlu1 %v1463_v7, %s1486_s24 }
 0xffa   :  { %v871_v12 = vpop.permute.xlu1 %870 }
 0xffb   :  { %v873_v14 = vmul.f32 %v871_v12, %v868_v8 }
 0xffd   :  { %v875_v15 = vadd.f32 %v874_v13, %v873_v14 }
 0xfff   :  { %877 = vrot.lane.b32.xlu0 %v875_v15, %s1486_s24 }
0x1071   :  { %v878_v16 = vpop.permute.xlu0 %877 }
0x1072   :  { %1322 = vmatmul.mubr.msk.f32.vlgmr.msra.gmra.mrb[10].mxu1 %vm271_vm8, %v878_v16 }
0x1145   :  { %v947_v19 = vpop.f32.mrb[10].mxu1 }
0x1146   :  { %v948_v20 = vadd.f32 %v1604_v43, %v947_v19  ;;  %v1323_v21 = vpop.f32.mrb[11].mxu1 }
0x1148   :  { %v951_v22 = vadd.f32 %v948_v20, %v258_v61  ;;  %959 = vrot.lane.b32.xlu1 %v948_v20, %s1485_s23 }
0x114a   :  { %v1140_v23 = vmul.f32 -1.442695, %v951_v22 }
0x114c   :  { %1464 = vpow2.f32 %v1140_v23 }
0x1156   :  { %v1465_v24 = vpop.eup %1464 }
0x1157   :  { %v955_v25 = vadd.f32 1.0, %v1465_v24 }
0x1159   :  { %1466 = vrcp.f32 %v955_v25 }
0x1163   :  { %v1467_v26 = vpop.eup %1466 }
0x1164   :  { %v969_v32 = vsub.f32 1.0, %v1467_v26  ;;  %v975_v34 = vmul.f32 %v1467_v26, %v875_v15 }
0x11ba   :  { %v960_v27 = vpop.permute.xlu1 %959 }
0x11bb   :  { %v962_v28 = vmul.f32 %v1467_v26, %v960_v27 }
0x11bd   :  { %964 = vrot.lane.b32.xlu0 %v962_v28, %s1485_s23 }
0x122f   :  { %v965_v29 = vpop.permute.xlu0 %964 }
0x1230   :  { %v967_v30 = vadd.f32 %v965_v29, %v258_v61 }
0x1232   :  { %1468 = vtanh.f32 %v967_v30 }
0x123c   :  { %v1469_v31 = vpop.eup %1468 }
0x123d   :  { %971 = vrot.lane.b32.xlu1 %v1469_v31, %s1486_s24 }
0x12af   :  { %v972_v33 = vpop.permute.xlu1 %971 }
0x12b0   :  { %v974_v35 = vmul.f32 %v972_v33, %v969_v32 }
0x12b2   :  { %v976_v36 = vadd.f32 %v975_v34, %v974_v35 }
0x12b4   :  { %978 = vrot.lane.b32.xlu0 %v976_v36, %s1486_s24 }
0x1326   :  { %v979_v37 = vpop.permute.xlu0 %978 }
0x1327   :  { %1333 = vmatmul.mubr.msk.f32.vlgmr.msra.gmra.mrb[10].mxu0 %vm271_vm8, %v979_v37 }
0x13fa   :  { %v1048_v39 = vpop.f32.mrb[10].mxu0 }
0x13fb   :  { %v1049_v40 = vadd.f32 %v1604_v43, %v1048_v39  ;;  %v1334_v41 = vpop.f32.mrb[11].mxu0 }
0x13fd   :  { %v1052_v42 = vadd.f32 %v1714_v38, %v1049_v40  ;;  %1060 = vrot.lane.b32.xlu1 %v1049_v40, %s1485_s23 }
0x13ff   :  { %v1142_v44 = vmul.f32 -1.442695, %v1052_v42 }
0x1401   :  { %1470 = vpow2.f32 %v1142_v44 }
0x140b   :  { %v1471_v45 = vpop.eup %1470 }
0x140c   :  { %v1056_v46 = vadd.f32 1.0, %v1471_v45 }
0x140e   :  { %1472 = vrcp.f32 %v1056_v46 }
0x1418   :  { %v1473_v47 = vpop.eup %1472 }
0x1419   :  { %v1070_v18 = vsub.f32 1.0, %v1473_v47  ;;  %v1076_v55 = vmul.f32 %v1473_v47, %v976_v36 }
0x146f   :  { %v1061_v48 = vpop.permute.xlu1 %1060 }
0x1470   :  { %v1063_v49 = vmul.f32 %v1473_v47, %v1061_v48 }
0x1472   :  { %1065 = vrot.lane.b32.xlu0 %v1063_v49, %s1485_s23 }
0x1476   :  { %1083 = vrot.lane.b32.xlu0 %v1143_v50, %s1487_s10 }
0x14e4   :  { %v1066_v43 = vpop.permute.xlu0 %1065 }
0x14e5   :  { %v1068_v51 = vadd.f32 %v1714_v38, %v1066_v43 }
0x14e7   :  { %1474 = vtanh.f32 %v1068_v51 }
0x14e8   :  { %v1084_v56 = vpop.permute.xlu0 %1083 }
0x14f1   :  { %v1475_v52 = vpop.eup %1474 }
0x14f2   :  { %1072 = vrot.lane.b32.xlu1 %v1475_v52, %s1486_s24 }
0x1564   :  { %v1073_v53 = vpop.permute.xlu1 %1072 }
0x1565   :  { %v1075_v54 = vmul.f32 %v1073_v53, %v1070_v18 }
0x1567   :  { %v1077_v57 = vadd.f32 %v1076_v55, %v1075_v54 }
0x1569   :  { %v1086_v58 = vmul.f32 %v1084_v56, %v1077_v57 }
0x156b   :  { %1088 = vrot.lane.b32.xlu1 %v1086_v58, %s1486_s24 }
0x15dd   :  { %v1089_v0 = vpop.permute.xlu1 %1088 }
0x15de   :  { %v1091_v59 = vsel %vm271_vm8, %v1089_v0, 0.0 }
0x15df   :  { %1092 = vadd.xlane.f32.xlu0 %v1091_v59 }
0x166c   :  { %v1093_v60 = vpop.xlane.xlu0 %1092 }
0x166d   :  { %v1094_v61 = vadd.f32 %v1143_v50, %v1093_v60 }
0x166f   :  { %v1144_v38 = vmul.f32 -1.442695, %v1094_v61 }
0x1671   :  { %1476 = vpow2.f32 %v1144_v38 }
0x167b   :  { %v1477_v62 = vpop.eup %1476 }
0x167c   :  { %v1098_v63 = vadd.f32 1.0, %v1477_v62 }
0x167e   :  { %1478 = vrcp.f32 %v1098_v63 }
0x1688   :  { %v1479_v1 = vpop.eup %1478 }
0x1689   :  { %1102 = vrot.lane.b32.xlu1 %v1479_v1, %s1486_s24 }
0x16fb   :  { %v1103_v2 = vpop.permute.xlu1 %1102 }
0x16fc   :  { %1106 = vst.msk [vmem:[%s1747_s2] sm:$0x3] %vm1105_vm0, %v1103_v2 }

</bundles_post_ra>
